<compile_context>
chip_gen: v7x
topology: tpu7x:2x2x1
jax: 0.10.0
libtpu: 0.0.40
codegen_flags: <defaults>
</compile_context>

<pallas_src>
import jax
import jax.numpy as jnp
from jax.experimental import pallas as pl
from jax.experimental.pallas import tpu as pltpu

LANES = 128
SUBLANES = 8
TARGET_BLOCK_BYTES = 1 << 20   # ~1 MiB per streaming input per pipeline buffer


def _cdiv(a, b):
    return -(-a // b)


def _round_up(a, b):
    return _cdiv(a, b) * b


def _detect_num_tensorcores():
    """2 only on chips with 2 TensorCores per chip (v4/v5p megacore, v7x).
    On v5e/v6e (1 TC) a 'parallel' grid axis is just a serial loop, so splitting
    only adds duplicate accumulator init and a possible wasted clamped step."""
    try:
        kind = jax.devices()[0].device_kind.lower()
    except Exception:
        return 1
    return 2 if ("v7" in kind or "v5p" in kind or "v4" in kind) else 1


def _to_rows(x):
    """Flatten to a lane-dense (rows, 128) view in the array's native dtype.

    The reshape is free when x.size % 128 == 0 (the common case). Otherwise we
    pad the flattened array with zeros (neutral for (a-b)^2).
    # TODO(synk): a fully pad-free ragged path would need 1-D manual DMA plus an
    # in-kernel lane mask; not worth it for the <128-element tail here.
    """
    flat = jnp.ravel(x)
    pad = (-flat.shape[0]) % LANES
    if pad:
        flat = jnp.pad(flat, (0, pad))
    return flat.reshape(-1, LANES)


def _make_kernel(n_rows, n_blocks, blk_rows, blocks_per_core, has_tail, has_overhang):
    def kernel(yh_ref, y_ref, p_ref, sse_ref, l1_ref):
        c = pl.program_id(0)   # core-split ("parallel") axis
        i = pl.program_id(1)   # streaming ("arbitrary"/reduction) axis
        blk = c * blocks_per_core + i

        @pl.when(i == 0)
        def _init():
            sse_ref[...] = jnp.zeros_like(sse_ref)
            l1_ref[...] = jnp.zeros_like(l1_ref)

        # L1 over ALL parameters, computed once (core 0, step 0). The params block
        # is small, its block index never changes (DMA'd exactly once), and it stays
        # resident in VMEM for the whole grid.
        # TODO(synk): for very large models, tile the params over the streaming axis
        # (or cap with pl.Buffered(1)) instead of keeping one resident block.
        @pl.when(jnp.logical_and(i == 0, c == 0))
        def _l1():
            p = jnp.abs(p_ref[...].astype(jnp.float32))
            l1_ref[...] = p.reshape(-1, SUBLANES, LANES).sum(axis=0)

        def accumulate(masked):
            d = yh_ref[...].astype(jnp.float32) - y_ref[...].astype(jnp.float32)
            if masked:
                # Zero rows that fall beyond the real data (ragged tail block).
                row_start = blk * blk_rows
                row_idx = jax.lax.broadcasted_iota(jnp.int32, (blk_rows, LANES), 0)
                d = jnp.where(row_start + row_idx < n_rows, d, 0.0)
            # VPU-only partial reduction into a single vreg-shaped accumulator.
            sse_ref[...] += (d * d).reshape(-1, SUBLANES, LANES).sum(axis=0)

        if not has_tail and not has_overhang:
            # Every block is full and in range: pure unmasked fast path, no extra ops.
            accumulate(False)
        else:
            last_full = n_blocks - 1 if has_tail else n_blocks

            @pl.when(blk < last_full)
            def _fast():
                accumulate(False)

            if has_tail:
                @pl.when(blk == n_blocks - 1)
                def _tail():
                    accumulate(True)

            # blk >= n_blocks (inexact core split, at most one step): compute is
            # skipped entirely; its block index is clamped to the previous step's
            # index in the index_map so Pallas issues no extra DMA either.

    return kernel


def l1_loss_forward(y_hat, y, model_parameters, L1_lambda):
    """model_parameters: list of (name, param) pairs, like module.named_parameters()."""
    assert y_hat.shape == y.shape
    n_elems = y.size

    yh_rows = _to_rows(y_hat)
    y_rows = _to_rows(y)
    n_rows = yh_rows.shape[0]

    # Parameters: stream in their NATIVE dtype (upcast to f32 in-kernel), pad the
    # tiny payload to an (8,128) multiple with zeros (neutral for |.|-sum).
    if model_parameters:
        flat_p = jnp.concatenate([jnp.ravel(p) for _, p in model_parameters])
    else:
        flat_p = jnp.zeros((SUBLANES * LANES,), jnp.float32)
    ppad = (-flat_p.shape[0]) % (SUBLANES * LANES)
    if ppad:
        flat_p = jnp.pad(flat_p, (0, ppad))
    p_rows_arr = flat_p.reshape(-1, LANES)
    p_rows = p_rows_arr.shape[0]

    # Block sizing: dtype-aware, ~1 MiB per input per pipeline buffer
    # (2048 rows for f32, 4096 for bf16). All static Python ints.
    row_bytes = LANES * max(jnp.dtype(y_hat.dtype).itemsize, jnp.dtype(y.dtype).itemsize)
    max_blk_rows = max(SUBLANES, (TARGET_BLOCK_BYTES // row_bytes) // SUBLANES * SUBLANES)
    blk_rows = min(max_blk_rows, _round_up(n_rows, SUBLANES))
    n_blocks = _cdiv(n_rows, blk_rows)

    # Core split: 2-way only on 2-TC chips, and only if there is work to split.
    ncores = max(1, min(_detect_num_tensorcores(), n_blocks))
    blocks_per_core = _cdiv(n_blocks, ncores)
    has_overhang = ncores * blocks_per_core != n_blocks   # at most one skipped step
    has_tail = (n_rows % blk_rows) != 0                   # one ragged (masked) block

    kernel = _make_kernel(n_rows, n_blocks, blk_rows, blocks_per_core,
                          has_tail, has_overhang)

    if has_overhang:
        def data_map(c, i):
            # Clamp the single out-of-range step onto the previous block index so
            # no extra DMA is issued; the kernel skips its compute.
            return (jnp.minimum(c * blocks_per_core + i, n_blocks - 1), 0)
    else:
        def data_map(c, i):
            return (c * blocks_per_core + i, 0)

    sse_part, l1_part = pl.pallas_call(
        kernel,
        out_shape=(
            jax.ShapeDtypeStruct((ncores * SUBLANES, LANES), jnp.float32),
            jax.ShapeDtypeStruct((ncores * SUBLANES, LANES), jnp.float32),
        ),
        grid_spec=pltpu.PrefetchScalarGridSpec(
            num_scalar_prefetch=0,
            grid=(ncores, blocks_per_core),
            in_specs=[
                pl.BlockSpec((blk_rows, LANES), data_map),
                pl.BlockSpec((blk_rows, LANES), data_map),
                pl.BlockSpec((p_rows, LANES), lambda c, i: (0, 0)),
            ],
            out_specs=[
                pl.BlockSpec((SUBLANES, LANES), lambda c, i: (c, 0)),
                pl.BlockSpec((SUBLANES, LANES), lambda c, i: (c, 0)),
            ],
        ),
        compiler_params=pltpu.CompilerParams(
            dimension_semantics=("parallel", "arbitrary")),
    )(yh_rows, y_rows, p_rows_arr)

    # Single final cross-lane/sublane reduce, done once in XLA.
    mse = jnp.sum(sse_part) / jnp.float32(n_elems)
    l1_reg = jnp.sum(l1_part)
    return mse + jnp.float32(L1_lambda) * l1_reg


if __name__ == "__main__":
    key = jax.random.PRNGKey(0)
    ks = jax.random.split(key, 10)

    # Predictions / targets, NCHW like PyTorch: batch=2, channels=4, 16x16.
    y_hat = jax.random.normal(ks[0], (2, 4, 16, 16), dtype=jnp.float32)
    y = jax.random.normal(ks[1], (2, 4, 16, 16), dtype=jnp.float32)

    # Synthetic deterministic "model parameters" (name, param) pairs.
    model_parameters = [
        ("conv.weight", 0.1 * jax.random.normal(ks[2], (4, 4, 3, 3), jnp.float32)),
        ("conv.bias",   0.1 * jax.random.normal(ks[3], (4,), jnp.float32)),
        ("fc.weight",   0.1 * jax.random.normal(ks[4], (10, 32), jnp.float32)),
        ("fc.bias",     0.1 * jax.random.normal(ks[5], (10,), jnp.float32)),
    ]
    L1_lambda = 1e-3

    def ref_loss(a, b):
        d = a.astype(jnp.float32) - b.astype(jnp.float32)
        return jnp.mean(d * d) + jnp.float32(L1_lambda) * sum(
            jnp.sum(jnp.abs(p.astype(jnp.float32))) for _, p in model_parameters)

    # 1) Primary case (matches the module's typical NCHW usage): pure fast path.
    loss = jax.block_until_ready(
        l1_loss_forward(y_hat, y, model_parameters, L1_lambda))
    assert jnp.allclose(loss, ref_loss(y_hat, y), rtol=1e-4, atol=1e-5), (
        loss, ref_loss(y_hat, y))

    # 2) Awkward size: exercises lane padding + the gated tail-row mask path.
    a = jax.random.normal(ks[6], (2, 3, 7, 5), dtype=jnp.float32)
    b = jax.random.normal(ks[7], (2, 3, 7, 5), dtype=jnp.float32)
    loss2 = jax.block_until_ready(
        l1_loss_forward(a, b, model_parameters, L1_lambda))
    assert jnp.allclose(loss2, ref_loss(a, b), rtol=1e-4, atol=1e-5), (
        loss2, ref_loss(a, b))

    # 3) Larger bf16 case: dtype-aware block sizing, in-kernel upcast, streaming.
    c_ = jax.random.normal(ks[8], (8, 8, 64, 64), dtype=jnp.bfloat16)
    d_ = jax.random.normal(ks[9], (8, 8, 64, 64), dtype=jnp.bfloat16)
    loss3 = jax.block_until_ready(
        l1_loss_forward(c_, d_, model_parameters, L1_lambda))
    assert jnp.allclose(loss3, ref_loss(c_, d_), rtol=1e-4, atol=1e-4), (
        loss3, ref_loss(c_, d_))

    print("KERNEL_OK")
</pallas_src>

<mosaic_0001>
module attributes {stable_mosaic.version = 11 : i64} {
  func.func @kernel(%arg0: i32, %arg1: i32, %arg2: memref<16x128xf32, #tpu.memory_space<vmem>>, %arg3: memref<16x128xf32, #tpu.memory_space<vmem>>, %arg4: memref<8x128xf32, #tpu.memory_space<vmem>>, %arg5: memref<8x128xf32, #tpu.memory_space<vmem>>, %arg6: memref<8x128xf32, #tpu.memory_space<vmem>>) attributes {dimension_semantics = [#tpu.dimension_semantics<parallel>, #tpu.dimension_semantics<arbitrary>], iteration_bounds = array<i64: 1, 1>, scalar_prefetch = 0 : i64, scratch_operands = 0 : i64, tpu.core_type = #tpu.core_type<tc>, window_params = [{transform_indices = @transform_0, window_bounds = array<i64: 16, 128>}, {transform_indices = @transform_1, window_bounds = array<i64: 16, 128>}, {pipeline_mode = #tpu.pipeline_mode<synchronous>, transform_indices = @transform_2, window_bounds = array<i64: 8, 128>}, {transform_indices = @transform_3, window_bounds = array<i64: 8, 128>}, {transform_indices = @transform_4, window_bounds = array<i64: 8, 128>}]} {
    %c0_i32 = arith.constant 0 : i32
    %0 = arith.cmpi eq, %arg1, %c0_i32 : i32
    %1 = arith.extui %0 : i1 to i32
    %c0_i32_0 = arith.constant 0 : i32
    %2 = arith.cmpi ne, %1, %c0_i32_0 : i32
    scf.if %2 {
      %cst_11 = arith.constant 0.000000e+00 : f32
      %17 = vector.broadcast %cst_11 : f32 to vector<8x128xf32>
      %c0_12 = arith.constant 0 : index
      %c0_13 = arith.constant 0 : index
      %18 = vector.load %arg5[%c0_12, %c0_13] : memref<8x128xf32, #tpu.memory_space<vmem>>, vector<8x128xf32>
      tpu.vector_store %arg5[%c0_12, %c0_13], %17 {strides = array<i32>} : memref<8x128xf32, #tpu.memory_space<vmem>>, vector<8x128xf32>,
      %cst_14 = arith.constant 0.000000e+00 : f32
      %19 = vector.broadcast %cst_14 : f32 to vector<8x128xf32>
      %c0_15 = arith.constant 0 : index
      %c0_16 = arith.constant 0 : index
      %20 = vector.load %arg6[%c0_15, %c0_16] : memref<8x128xf32, #tpu.memory_space<vmem>>, vector<8x128xf32>
      tpu.vector_store %arg6[%c0_15, %c0_16], %19 {strides = array<i32>} : memref<8x128xf32, #tpu.memory_space<vmem>>, vector<8x128xf32>,
    } else {
    }
    %c0_i32_1 = arith.constant 0 : i32
    %3 = arith.cmpi eq, %arg1, %c0_i32_1 : i32
    %c0_i32_2 = arith.constant 0 : i32
    %4 = arith.cmpi eq, %arg0, %c0_i32_2 : i32
    %5 = arith.andi %3, %4 : i1
    %6 = arith.extui %5 : i1 to i32
    %c0_i32_3 = arith.constant 0 : i32
    %7 = arith.cmpi ne, %6, %c0_i32_3 : i32
    scf.if %7 {
      %c0_11 = arith.constant 0 : index
      %c0_12 = arith.constant 0 : index
      %17 = vector.load %arg4[%c0_11, %c0_12] : memref<8x128xf32, #tpu.memory_space<vmem>>, vector<8x128xf32>
      %18 = math.absf %17 : vector<8x128xf32>
      %19 = vector.shape_cast %18 : vector<8x128xf32> to vector<1x8x128xf32>
      %cst_13 = arith.constant dense<0.000000e+00> : vector<8x128xf32>
      %20 = vector.multi_reduction <add>, %19, %cst_13 [0] : vector<1x8x128xf32> to vector<8x128xf32>
      %c0_14 = arith.constant 0 : index
      %c0_15 = arith.constant 0 : index
      %21 = vector.load %arg6[%c0_14, %c0_15] : memref<8x128xf32, #tpu.memory_space<vmem>>, vector<8x128xf32>
      tpu.vector_store %arg6[%c0_14, %c0_15], %20 {strides = array<i32>} : memref<8x128xf32, #tpu.memory_space<vmem>>, vector<8x128xf32>,
    } else {
    }
    %c0 = arith.constant 0 : index
    %c0_4 = arith.constant 0 : index
    %8 = vector.load %arg2[%c0, %c0_4] : memref<16x128xf32, #tpu.memory_space<vmem>>, vector<16x128xf32>
    %c0_5 = arith.constant 0 : index
    %c0_6 = arith.constant 0 : index
    %9 = vector.load %arg3[%c0_5, %c0_6] : memref<16x128xf32, #tpu.memory_space<vmem>>, vector<16x128xf32>
    %10 = arith.subf %8, %9 : vector<16x128xf32>
    %c0_7 = arith.constant 0 : index
    %c0_8 = arith.constant 0 : index
    %11 = vector.load %arg5[%c0_7, %c0_8] : memref<8x128xf32, #tpu.memory_space<vmem>>, vector<8x128xf32>
    %12 = arith.mulf %10, %10 : vector<16x128xf32>
    %13 = vector.shape_cast %12 : vector<16x128xf32> to vector<2x8x128xf32>
    %cst = arith.constant dense<0.000000e+00> : vector<8x128xf32>
    %14 = vector.multi_reduction <add>, %13, %cst [0] : vector<2x8x128xf32> to vector<8x128xf32>
    %15 = arith.addf %11, %14 : vector<8x128xf32>
    %c0_9 = arith.constant 0 : index
    %c0_10 = arith.constant 0 : index
    %16 = vector.load %arg5[%c0_9, %c0_10] : memref<8x128xf32, #tpu.memory_space<vmem>>, vector<8x128xf32>
    tpu.vector_store %arg5[%c0_9, %c0_10], %15 {strides = array<i32>} : memref<8x128xf32, #tpu.memory_space<vmem>>, vector<8x128xf32>,
    return
  }
  func.func @transform_0(%arg0: i32, %arg1: i32) -> (i32, i32) {
    %c1_i32 = arith.constant 1 : i32
    %0 = arith.muli %arg0, %c1_i32 : i32
    %1 = arith.addi %0, %arg1 : i32
    %c0_i32 = arith.constant 0 : i32
    %c0_i32_0 = arith.constant 0 : i32
    return %1, %c0_i32 : i32, i32
  }
  func.func @transform_1(%arg0: i32, %arg1: i32) -> (i32, i32) {
    %c1_i32 = arith.constant 1 : i32
    %0 = arith.muli %arg0, %c1_i32 : i32
    %1 = arith.addi %0, %arg1 : i32
    %c0_i32 = arith.constant 0 : i32
    %c0_i32_0 = arith.constant 0 : i32
    return %1, %c0_i32 : i32, i32
  }
  func.func @transform_2(%arg0: i32, %arg1: i32) -> (i32, i32) {
    %c0_i32 = arith.constant 0 : i32
    %c0_i32_0 = arith.constant 0 : i32
    %c0_i32_1 = arith.constant 0 : i32
    return %c0_i32, %c0_i32_0 : i32, i32
  }
  func.func @transform_3(%arg0: i32, %arg1: i32) -> (i32, i32) {
    %c0_i32 = arith.constant 0 : i32
    %c0_i32_0 = arith.constant 0 : i32
    return %arg0, %c0_i32 : i32, i32
  }
  func.func @transform_4(%arg0: i32, %arg1: i32) -> (i32, i32) {
    %c0_i32 = arith.constant 0 : i32
    %c0_i32_0 = arith.constant 0 : i32
    return %arg0, %c0_i32 : i32, i32
  }
}

</mosaic_0001>

<bundles_post_ra>
// kernel: tpu_custom_call.1
= control target key start
LH: loop header
LB: loop body
LE: loop exit
PB: predicated region body
PF: predicated region fallthrough
CT: control target
= control target key end

     0   :  { %10 = vsyncpa [#allocation3], 0  ;;  %s351_s0 = inlined_call_operand.hbm [shape: f32[16,128], index: 0, kind: input, shape index: {}]   ;;  %s352_s1 = inlined_call_operand.hbm [shape: f32[16,128], index: 1, kind: input, shape index: {}]   ;;  %s353_s2 = inlined_call_operand.hbm [shape: f32[8,128], index: 2, kind: input, shape index: {}]   ;;  %s354_s3 = inlined_call_operand.hbm [shape: f32[8,128], index: 3, kind: output, shape index: {0}]   ;;  %s355_s4 = inlined_call_operand.hbm [shape: f32[8,128], index: 4, kind: output, shape index: {1}]  }
   0x1   :  { %11 = vsyncpa [#allocation6], 0 }
   0x2   :  { %12 = vsyncpa [#allocation4], 0 }
   0x3   :  { %13 = vsyncpa [#allocation10], 0  ;;  %s252_s15 = smov [#allocation5]   ;;  %s253_s17 = smov [#allocation2]  }
   0x4   :  { %s39_s16 = sshll.u32 %s252_s15, 4  ;;  %s23_s18 = sshll.u32 %s253_s17, 4  ;;  %s40_s16 = int_to_ptr.vmem [resolvable:$true] %s39_s16  ;;  %s284_s18 = int_to_ptr.vmem [resolvable:$true] %s23_s18 }
   0x5   :  { %s134_s21 = scalar_lea.hbm %s352_s1, 256 }
   0x6   :  { %p135_p0 = scmp.ne.s32.totalorder %s352_s1, %s134_s21  ;;  %p138_p1 = scmp.lt.u32.totalorder %s134_s21, %s352_s1 }
   0x8   :  { %p140_p2 = pnand %p138_p1, %p135_p0 }
   0xa   :  { %143 = shalt.err (!%p140_p2)
}
   0xb   :  { %s144_s26 = scalar_lea.vmem %s40_s16, 256  ;;  %p149_p4 = scmp.lt.s32.totalorder %s40_s16, %s40_s16 }
   0xc   :  { %p145_p3 = scmp.ne.s32.totalorder %s40_s16, %s144_s26  ;;  %p150_p5 = scmp.lt.s32.totalorder %s144_s26, %s144_s26 }
   0xe   :  { %p151_p6 = por %p150_p5, %p149_p4 }
  0x10   :  { %p152_p7 = pnand %p151_p6, %p145_p3 }
  0x12   :  { %155 = shalt.err (!%p152_p7)
}
  0x13   :  { %s254_s27 = smov 128   ;;  %s255_s28 = smov 8  }
  0x14   :  { %45 = dma.hbm_to_vmem [thread:$0]  %s352_s1, 256, %s40_s16, [#allocation6], %s254_s27, %s254_s27, %s255_s28  }
  0x15   :  { %s156_s7 = scalar_lea.hbm %s351_s0, 256 }
  0x16   :  { %p157_p8 = scmp.ne.s32.totalorder %s351_s0, %s156_s7  ;;  %p160_p9 = scmp.lt.u32.totalorder %s156_s7, %s351_s0 }
  0x18   :  { %p162_p10 = pnand %p160_p9, %p157_p8 }
  0x1a   :  { %165 = shalt.err (!%p162_p10)
}
  0x1b   :  { %s166_s12 = scalar_lea.vmem %s284_s18, 256  ;;  %p171_p12 = scmp.lt.s32.totalorder %s284_s18, %s284_s18 }
  0x1c   :  { %p167_p11 = scmp.ne.s32.totalorder %s284_s18, %s166_s12  ;;  %p172_p13 = scmp.lt.s32.totalorder %s166_s12, %s166_s12 }
  0x1e   :  { %p173_p0 = por %p172_p13, %p171_p12 }
  0x20   :  { %p174_p1 = pnand %p173_p0, %p167_p11 }
  0x22   :  { %177 = shalt.err (!%p174_p1)
}
  0x23   :  { %29 = dma.hbm_to_vmem [thread:$0]  %s351_s0, 256, %s284_s18, [#allocation3], %s254_s27, %s254_s27, %s255_s28  }
  0x24   :  { %s256_s14 = smov [#allocation7]   ;;  %s178_s19 = scalar_lea.hbm %s353_s2, 128 }
  0x25   :  { %s52_s15 = sshll.u32 %s256_s14, 4  ;;  %p179_p2 = scmp.ne.s32.totalorder %s353_s2, %s178_s19  ;;  %s53_s15 = int_to_ptr.vmem [resolvable:$true] %s52_s15 }
  0x26   :  { %p182_p3 = scmp.lt.u32.totalorder %s178_s19, %s353_s2 }
  0x28   :  { %p184_p4 = pnand %p182_p3, %p179_p2 }
  0x2a   :  { %187 = shalt.err (!%p184_p4)
}
  0x2b   :  { %s188_s24 = scalar_lea.vmem %s53_s15, 128  ;;  %p193_p6 = scmp.lt.s32.totalorder %s53_s15, %s53_s15 }
  0x2c   :  { %p189_p5 = scmp.ne.s32.totalorder %s53_s15, %s188_s24  ;;  %p194_p7 = scmp.lt.s32.totalorder %s188_s24, %s188_s24 }
  0x2e   :  { %p195_p8 = por %p194_p7, %p193_p6 }
  0x30   :  { %p196_p9 = pnand %p195_p8, %p189_p5 }
  0x32   :  { %199 = shalt.err (!%p196_p9)
}
  0x33   :  { %55 = dma.hbm_to_vmem [thread:$0]  %s353_s2, 128, %s53_s15, [#allocation6]  }
  0x34   :  { %244 = dma.done.wait [#allocation3], 256  }
  0x35   :  { %245 = vsyncadd [#allocation3], 4294967040 }
  0x36   :  { %246 = dma.done.wait [#allocation6], 384  }
  0x37   :  { %247 = vsyncadd [#allocation6], 4294966912  ;;  %s257_s25 = smov [#allocation9]   ;;  %v80_v0 = vld [vmem:[#allocation7] sm:$0xff]  ;;  %v85_v2 = vld [vmem:[#allocation2 + $0x8] sm:$0xff] }
  0x38   :  { %s112_s26 = sshll.u32 %s257_s25, 4  ;;  %v84_v1 = vld [vmem:[#allocation2] sm:$0xff]  ;;  %v81_v3 = vand.u32 2147483647, %v80_v0  ;;  %v86_v4 = vld [vmem:[#allocation5] sm:$0xff]  ;;  %v87_v5 = vld [vmem:[#allocation5 + $0x8] sm:$0xff]  ;;  %s113_s26 = int_to_ptr.vmem [resolvable:$true] %s112_s26 }
  0x39   :  { %v88_v6 = vsub.f32 %v84_v1, %v86_v4  ;;  %v89_v7 = vsub.f32 %v85_v2, %v87_v5  ;;  %s200_s27 = scalar_lea.vmem %s113_s26, 128  ;;  %p205_p11 = scmp.lt.s32.totalorder %s113_s26, %s113_s26 }
  0x3a   :  { %83 = vst [vmem:[#allocation9] sm:$0xff] %v81_v3  ;;  %p201_p10 = scmp.ne.s32.totalorder %s113_s26, %s200_s27  ;;  %p206_p12 = scmp.lt.s32.totalorder %s200_s27, %s200_s27 }
  0x3b   :  { %v91_v8 = vmul.f32 %v88_v6, %v88_v6  ;;  %v92_v9 = vmul.f32 %v89_v7, %v89_v7 }
  0x3c   :  { %p207_p13 = por %p206_p12, %p205_p11 }
  0x3e   :  { %p208_p0 = pnand %p207_p13, %p201_p10 }
  0x40   :  { %211 = shalt.err (!%p208_p0)
}
  0x41   :  { %s212_s29 = scalar_lea.hbm %s355_s4, 128 }
  0x42   :  { %p213_p1 = scmp.ne.s32.totalorder %s355_s4, %s212_s29  ;;  %p216_p2 = scmp.lt.u32.totalorder %s212_s29, %s355_s4 }
  0x44   :  { %p218_p3 = pnand %p216_p2, %p213_p1 }
  0x46   :  { %221 = shalt.err (!%p218_p3)
}
  0x47   :  { %115 = dma.vmem_to_hbm [thread:$0]  %s113_s26, 128, %s355_s4, [#allocation10]   ;;  %v93_v10 = vadd.f32 %v92_v9, %v91_v8 }
  0x48   :  { %s258_s10 = smov [#allocation8]  }
  0x49   :  { %s102_s11 = sshll.u32 %s258_s10, 4  ;;  %95 = vst [vmem:[#allocation8] sm:$0xff] %v93_v10  ;;  %s103_s11 = int_to_ptr.vmem [resolvable:$true] %s102_s11 }
  0x4a   :  { %s222_s12 = scalar_lea.vmem %s103_s11, 128  ;;  %p227_p5 = scmp.lt.s32.totalorder %s103_s11, %s103_s11 }
  0x4b   :  { %p223_p4 = scmp.ne.s32.totalorder %s103_s11, %s222_s12  ;;  %p228_p6 = scmp.lt.s32.totalorder %s222_s12, %s222_s12 }
  0x4d   :  { %p229_p7 = por %p228_p6, %p227_p5 }
  0x4f   :  { %p230_p8 = pnand %p229_p7, %p223_p4 }
  0x51   :  { %233 = shalt.err (!%p230_p8)
}
  0x52   :  { %s234_s14 = scalar_lea.hbm %s354_s3, 128 }
  0x53   :  { %p235_p9 = scmp.ne.s32.totalorder %s354_s3, %s234_s14  ;;  %p238_p10 = scmp.lt.u32.totalorder %s234_s14, %s354_s3 }
  0x55   :  { %p240_p11 = pnand %p238_p10, %p235_p9 }
  0x57   :  { %243 = shalt.err (!%p240_p11)
}
  0x58   :  { %105 = dma.vmem_to_hbm [thread:$0]  %s103_s11, 128, %s354_s3, [#allocation4]  }
  0x59   :  { %248 = dma.done.wait [#allocation4], 128  }
  0x5a   :  { %249 = vsyncadd [#allocation4], 4294967168 }
  0x5b   :  { %250 = dma.done.wait [#allocation10], 128  }
  0x5c   :  { %251 = vsyncadd [#allocation10], 4294967168 }
  0x5d   :  { %122 = vsyncpa [#allocation3], 1 }
  0x5e   :  { %123 = vsyncpa [#allocation6], 1 }
  0x5f   :  { %124 = vsyncpa [#allocation4], 1 }
  0x60   :  { %125 = vsyncpa [#allocation10], 1 }

</bundles_post_ra>
